<compile_context>
chip_gen: v6e
topology: v6e:2x2x1
jax: 0.10.0
libtpu: 0.0.40
codegen_flags: <defaults>
</compile_context>

<pallas_src>
from functools import partial

import numpy as np
import jax
import jax.numpy as jnp
from jax import lax
from jax.experimental import pallas as pl
from jax.experimental.pallas import tpu as pltpu


# ----------------------------------------------------------------------------
# helpers
# ----------------------------------------------------------------------------
def _round_up(x: int, m: int) -> int:
    return ((x + m - 1) // m) * m


def _vmem_capacity_bytes() -> int:
    """Physical VMEM of the local TPU generation (128 MiB v5e/v6e, 64 MiB v7x/TC)."""
    try:
        cap = int(pltpu.get_tpu_info().vmem_capacity_bytes)
        if cap >= (16 << 20):
            return cap
    except Exception:
        pass
    return 64 << 20  # conservative fallback (v7x per-core VMEM)


def _plan_tiles(N, D, C, x_item, cls_item, out_item, budget, phys,
                tile_n=None, tile_c=None):
    """Pick (tile_n, tile_c) such that
         class block (conservatively counted double-buffered)
       + double-buffered x row tile + its in-kernel compute-dtype copy
       + double-buffered output tile + f32 logits temporary
       fit under `budget` bytes of VMEM."""
    Dp_r = _round_up(D, 128)                 # VMEM lane footprint of one D-row
    Cp0 = _round_up(C, 128)
    # sublane granularity for the row tile (8 for f32, 16 for bf16, 32 for fp8)
    row_g = max(8, 32 // int(x_item), 32 // int(out_item))

    def per_row(tc):
        return (2 * Dp_r * x_item + Dp_r * cls_item
                + 2 * tc * out_item + tc * 4)

    def cls_bytes(tc):
        return 2 * tc * Dp_r * cls_item      # conservative: count 2 buffers

    if tile_c is None:
        fixed = row_g * (2 * Dp_r * x_item + Dp_r * cls_item)
        per_c = 2 * Dp_r * cls_item + row_g * (2 * out_item + 4)
        tc_max = max((budget - fixed) // per_c, 0)
        tile_c = min(Cp0, max(128, (tc_max // 128) * 128))
    else:
        tile_c = min(Cp0, max(128, _round_up(int(tile_c), 128)))

    assert cls_bytes(tile_c) + row_g * per_row(tile_c) <= budget, (
        f"minimum row tile ({row_g}x{D}) plus class tile ({tile_c}x{D}) exceed the "
        f"VMEM budget of {budget} bytes; embedding_dim too large for this kernel")

    if tile_n is None:
        cap = 2048 if phys >= (96 << 20) else 1024   # bigger row tiles on 128-MiB parts
        avail = budget - cls_bytes(tile_c)
        tn = min(cap, avail // per_row(tile_c))
        tn = max(row_g, (tn // row_g) * row_g)
    else:
        tn = max(row_g, _round_up(int(tile_n), row_g))
    tn = min(tn, _round_up(N, row_g))
    return int(tn), int(tile_c)


# ----------------------------------------------------------------------------
# Pallas kernel: fused  x @ cls_scaled.T  + sigmoid   (all ntypes at once)
# ----------------------------------------------------------------------------
def _distmult_sigmoid_kernel(x_ref, cls_ref, o_ref, *, compute_dtype):
    # x_ref:   (TILE_N, D)      node-embedding row tile (source dtype, cast here)
    # cls_ref: (TILE_C, D)      pre-scaled, pre-permuted class embeddings
    # o_ref:   (TILE_N, TILE_C) sigmoid(scores) in the output dtype
    x = x_ref[...].astype(compute_dtype)          # in-kernel cast: no HBM copy of x
    c = cls_ref[...].astype(compute_dtype)
    logits = lax.dot_general(
        x, c,
        dimension_numbers=(((1,), (1,)), ((), ())),   # contract D vs D (no .T relayout)
        preferred_element_type=jnp.float32)           # MXU, f32 accumulation
    o_ref[...] = jax.nn.sigmoid(logits).astype(o_ref.dtype)   # EUP sigmoid


def fused_distmult_sigmoid(embeddings: jnp.ndarray,
                           cls_scaled: jnp.ndarray,
                           *,
                           compute_dtype=jnp.bfloat16,
                           out_dtype=None,
                           tile_n: int | None = None,
                           tile_c: int | None = None) -> jnp.ndarray:
    """sigmoid(embeddings @ cls_scaled.T) via one row(/class)-tiled Pallas call.

    embeddings: (N, D) (passed straight from HBM, any float dtype).
    cls_scaled: (C, D) already weight-scaled and row-permuted (f32).
    Returns (N, C) probabilities in `out_dtype` (defaults to compute_dtype).
    """
    N, D = embeddings.shape
    C, D2 = cls_scaled.shape
    assert D == D2, (D, D2)

    out_dtype = jnp.dtype(compute_dtype if out_dtype is None else out_dtype)
    x_item = jnp.dtype(embeddings.dtype).itemsize
    cls_item = jnp.dtype(compute_dtype).itemsize
    out_item = out_dtype.itemsize

    phys = _vmem_capacity_bytes()
    vmem_limit = min(phys // 2, 64 << 20)     # ~64 MiB on v5e/v6e, ~32 MiB on v7x
    budget = vmem_limit - (2 << 20)           # headroom for mosaic internal scratch

    tile_n, tile_c = _plan_tiles(N, D, C, x_item, cls_item, out_item,
                                 budget, phys, tile_n=tile_n, tile_c=tile_c)

    # Only the SMALL class matrix gets padded (lane-dense output columns, even split
    # into class tiles).  D stays ragged (full-dim block); N stays ragged (partial
    # last row block), so embeddings goes to the kernel with zero extra HBM traffic.
    Cp = _round_up(C, tile_c)
    cls = cls_scaled.astype(compute_dtype)
    if Cp != C:
        cls = jnp.pad(cls, ((0, Cp - C), (0, 0)))

    n_i = pl.cdiv(N, tile_n)
    n_j = Cp // tile_c
    kernel = partial(_distmult_sigmoid_kernel, compute_dtype=compute_dtype)

    if n_j == 1:
        grid = (n_i,)
        in_specs = [
            pl.BlockSpec((tile_n, D), lambda i: (i, 0)),   # stream row tiles of x
            pl.BlockSpec((Cp, D), lambda i: (0, 0)),       # constant -> VMEM-resident
        ]
        out_specs = pl.BlockSpec((tile_n, Cp), lambda i: (i, 0))
        dims = ("parallel",)
    else:
        # Class matrix too large to stay resident (v7x 64 MiB / huge C*D): tile C too.
        # Rows outer, classes inner => each x row tile is fetched once.
        grid = (n_i, n_j)
        in_specs = [
            pl.BlockSpec((tile_n, D), lambda i, j: (i, 0)),
            pl.BlockSpec((tile_c, D), lambda i, j: (j, 0)),
        ]
        out_specs = pl.BlockSpec((tile_n, tile_c), lambda i, j: (i, j))
        dims = ("parallel", "parallel")

    cls_reads = 1 if n_j == 1 else n_i
    cost = pl.CostEstimate(
        flops=2 * N * Cp * D,
        transcendentals=N * Cp,
        bytes_accessed=(N * D * x_item
                        + cls_reads * Cp * D * cls_item
                        + N * Cp * out_item))

    out = pl.pallas_call(
        kernel,
        out_shape=jax.ShapeDtypeStruct((N, Cp), out_dtype),
        grid=grid,
        in_specs=in_specs,
        out_specs=out_specs,
        compiler_params=pltpu.CompilerParams(
            dimension_semantics=dims,          # megacore-shard row (and class) tiles
            vmem_limit_bytes=vmem_limit),
        cost_estimate=cost,
    )(embeddings, cls)

    return out if Cp == C else out[:, :C]


# ----------------------------------------------------------------------------
# get_reorder_indices (static integer bookkeeping; ported to numpy)
# ----------------------------------------------------------------------------
def get_reorder_indices(class_sizes, class_indices, pred_ntypes, n_classes):
    mix_indices = {k: np.nonzero(np.asarray(v) != -1)[0] for k, v in class_indices.items()}
    cls_idx = np.stack([np.asarray(class_indices[nt]) for nt in pred_ntypes], axis=0)
    # descending sort along ntype axis; the owner (value != -1) sorts first
    sort_indices = np.argsort(-cls_idx, axis=0, kind="stable")
    class_idx_offset = {}
    offset = 0
    for nt in pred_ntypes:
        class_idx_offset[nt] = offset
        offset += class_sizes[nt]
    reorder_idx = []
    for i in range(n_classes):
        nt = pred_ntypes[sort_indices[0][i]]
        owned = np.nonzero(mix_indices[nt] == i)[0]
        assert owned.size == 1, (
            f"class {i} is not uniquely owned by ntype '{nt}' "
            f"(owners found: {owned.size})")
        reorder_idx.append(class_idx_offset[nt] + int(owned[0]))
    return np.asarray(reorder_idx, dtype=np.int32)


# ----------------------------------------------------------------------------
# LabelNodeClassifer forward (thin JAX glue around the single fused kernel)
# ----------------------------------------------------------------------------
def label_node_classifier_forward(embeddings, h_dict, weights,
                                  class_sizes, class_indices, pred_ntypes,
                                  n_classes, *,
                                  compute_dtype=jnp.bfloat16,
                                  out_dtype=None,
                                  tile_n=None, tile_c=None):
    # Fold the per-ntype DistMult weight into the SMALL class matrices (kept in f32):
    #   (x * w) @ cls.T == x @ (w * cls).T      (C_nt x D work instead of N x D)
    cls_rows = [h_dict[nt][:class_sizes[nt]] * weights[nt][None, :]
                for nt in pred_ntypes]
    cls_combined = jnp.concatenate(cls_rows, axis=0)           # (C_total, D), f32

    # Pre-permute rows by reorder_indices so the kernel emits the final column order.
    reorder = get_reorder_indices(class_sizes, class_indices, pred_ntypes, n_classes)
    cls_combined = cls_combined[reorder]

    # sigmoid is applied in-kernel; it commutes with the (already applied) permutation
    return fused_distmult_sigmoid(embeddings, cls_combined,
                                  compute_dtype=compute_dtype, out_dtype=out_dtype,
                                  tile_n=tile_n, tile_c=tile_c)


# ----------------------------------------------------------------------------
# Pure-JAX reference (mirrors the PyTorch forward exactly, f32)
# ----------------------------------------------------------------------------
def reference_forward(embeddings, h_dict, weights, class_sizes, class_indices,
                      pred_ntypes, n_classes):
    logits_list = []
    for ntype in pred_ntypes:
        cls_emb = h_dict[ntype][:class_sizes[ntype]]
        logits_list.append((embeddings * weights[ntype]) @ cls_emb.T)
    logits = jnp.concatenate(logits_list, axis=1)
    reorder = get_reorder_indices(class_sizes, class_indices, pred_ntypes, n_classes)
    logits = logits[:, jnp.asarray(reorder)]
    return jax.nn.sigmoid(logits)   # loss_type == 'BCE' -> Sigmoid


# ----------------------------------------------------------------------------
# self-test
# ----------------------------------------------------------------------------
def _build_problem(key, N, D, n_classes):
    assert n_classes % 2 == 0
    # ntype 'go' owns the even global classes, 'disease' owns the odd ones.
    idx_go = np.full((n_classes,), -1, dtype=np.int64)
    idx_dis = np.full((n_classes,), -1, dtype=np.int64)
    idx_go[0::2] = np.arange(n_classes // 2)
    idx_dis[1::2] = np.arange(n_classes // 2)
    class_indices = {"go": idx_go, "disease": idx_dis}
    class_sizes = {nt: int((v != -1).sum()) for nt, v in class_indices.items()}

    k1, k2, k3, k4, k5 = jax.random.split(key, 5)
    weights = {                     # torch.rand(embedding_dim) -> U[0,1)
        "go": jax.random.uniform(k1, (D,), dtype=jnp.float32),
        "disease": jax.random.uniform(k2, (D,), dtype=jnp.float32),
    }
    embeddings = jax.random.normal(k3, (N, D), dtype=jnp.float32)
    h_dict = {
        "go": jax.random.normal(k4, (class_sizes["go"] + 4, D), jnp.float32),
        "disease": jax.random.normal(k5, (class_sizes["disease"] + 6, D), jnp.float32),
    }
    return embeddings, h_dict, weights, class_sizes, class_indices, ("go", "disease")


if __name__ == "__main__":
    key = jax.random.PRNGKey(0)
    kA, kB = jax.random.split(key, 2)

    # ---------------- scenario A: small class count (resident class block) -------
    N, D, n_classes = 24, 32, 16
    emb, h_dict, weights, class_sizes, class_indices, pred_ntypes = \
        _build_problem(kA, N, D, n_classes)

    ref = jax.block_until_ready(reference_forward(
        emb, h_dict, weights, class_sizes, class_indices, pred_ntypes, n_classes))

    # run 1: f32 compute/out, forced small row tile (3-step row grid), tight check
    out_f32 = label_node_classifier_forward(
        emb, h_dict, weights, class_sizes, class_indices, pred_ntypes, n_classes,
        compute_dtype=jnp.float32, tile_n=8)
    out_f32 = jax.block_until_ready(out_f32)
    assert out_f32.shape == (N, n_classes), out_f32.shape
    np.testing.assert_allclose(np.asarray(out_f32), np.asarray(ref),
                               rtol=1e-5, atol=1e-5)

    # run 2: default bf16 MXU path, bf16 output, auto tiling (perf path)
    out_bf16 = label_node_classifier_forward(
        emb, h_dict, weights, class_sizes, class_indices, pred_ntypes, n_classes)
    out_bf16 = jax.block_until_ready(out_bf16)
    assert out_bf16.shape == (N, n_classes), out_bf16.shape
    assert out_bf16.dtype == jnp.bfloat16
    np.testing.assert_allclose(np.asarray(out_bf16, dtype=np.float32),
                               np.asarray(ref), rtol=3e-2, atol=3e-2)

    # ---------------- scenario B: exercise the class-tiled (2-axis grid) path ----
    N2, D2, n_classes2 = 24, 32, 300
    emb2, h_dict2, weights2, class_sizes2, class_indices2, pred_ntypes2 = \
        _build_problem(kB, N2, D2, n_classes2)

    ref2 = jax.block_until_ready(reference_forward(
        emb2, h_dict2, weights2, class_sizes2, class_indices2, pred_ntypes2, n_classes2))

    out2 = label_node_classifier_forward(
        emb2, h_dict2, weights2, class_sizes2, class_indices2, pred_ntypes2, n_classes2,
        tile_n=16, tile_c=128)        # forces grid=(2, 3): partial row block + C tiles
    out2 = jax.block_until_ready(out2)
    assert out2.shape == (N2, n_classes2), out2.shape
    np.testing.assert_allclose(np.asarray(out2, dtype=np.float32),
                               np.asarray(ref2), rtol=3e-2, atol=3e-2)

    print("KERNEL_OK")
</pallas_src>

<mosaic_0001>
module attributes {stable_mosaic.version = 11 : i64} {
  func.func @_distmult_sigmoid_kernel(%arg0: i32, %arg1: memref<8x32xf32, #tpu.memory_space<vmem>>, %arg2: memref<128x32xf32, #tpu.memory_space<vmem>>, %arg3: memref<8x128xf32, #tpu.memory_space<vmem>>) attributes {dimension_semantics = [#tpu.dimension_semantics<parallel>], iteration_bounds = array<i64: 3>, scalar_prefetch = 0 : i64, scratch_operands = 0 : i64, tpu.core_type = #tpu.core_type<tc>, window_params = [{transform_indices = @transform_0, window_bounds = array<i64: 8, 32>}, {pipeline_mode = #tpu.pipeline_mode<synchronous>, transform_indices = @transform_1, window_bounds = array<i64: 128, 32>}, {transform_indices = @transform_2, window_bounds = array<i64: 8, 128>}]} {
    %c0 = arith.constant 0 : index
    %c0_0 = arith.constant 0 : index
    %0 = vector.load %arg1[%c0, %c0_0] : memref<8x32xf32, #tpu.memory_space<vmem>>, vector<8x32xf32>
    %c0_1 = arith.constant 0 : index
    %c0_2 = arith.constant 0 : index
    %1 = vector.load %arg2[%c0_1, %c0_2] : memref<128x32xf32, #tpu.memory_space<vmem>>, vector<128x32xf32>
    %cst = arith.constant dense<0.000000e+00> : vector<8x128xf32>
    %2 = tpu.matmul %0, %1, %cst {dimension_numbers = #tpu.dot_dimension_numbers<[1], [1], [0], [0], [0, 0, 1, 0], [], []>} : vector<8x32xf32>, vector<128x32xf32>, vector<8x128xf32> -> vector<8x128xf32>
    %3 = arith.negf %2 : vector<8x128xf32>
    %4 = math.exp %3 : vector<8x128xf32>
    %cst_3 = arith.constant 1.000000e+00 : f32
    %5 = vector.broadcast %cst_3 : f32 to vector<8x128xf32>
    %6 = arith.addf %5, %4 : vector<8x128xf32>
    %7 = arith.divf %5, %6 : vector<8x128xf32>
    %c0_4 = arith.constant 0 : index
    %c0_5 = arith.constant 0 : index
    %8 = vector.load %arg3[%c0_4, %c0_5] : memref<8x128xf32, #tpu.memory_space<vmem>>, vector<8x128xf32>
    tpu.vector_store %arg3[%c0_4, %c0_5], %7 {strides = array<i32>} : memref<8x128xf32, #tpu.memory_space<vmem>>, vector<8x128xf32>,
    return
  }
  func.func @transform_0(%arg0: i32) -> (i32, i32) {
    %c0_i32 = arith.constant 0 : i32
    %c0_i32_0 = arith.constant 0 : i32
    return %arg0, %c0_i32 : i32, i32
  }
  func.func @transform_1(%arg0: i32) -> (i32, i32) {
    %c0_i32 = arith.constant 0 : i32
    %c0_i32_0 = arith.constant 0 : i32
    %c0_i32_1 = arith.constant 0 : i32
    return %c0_i32, %c0_i32_0 : i32, i32
  }
  func.func @transform_2(%arg0: i32) -> (i32, i32) {
    %c0_i32 = arith.constant 0 : i32
    %c0_i32_0 = arith.constant 0 : i32
    return %arg0, %c0_i32 : i32, i32
  }
}

</mosaic_0001>

<bundles_post_ra>
// kernel: tpu_custom_call.1
= control target key start
LH: loop header
LB: loop body
LE: loop exit
PB: predicated region body
PF: predicated region fallthrough
CT: control target
= control target key end

     0   :  { %7 = vsyncpa [#allocation3], 0  ;;  %s721_s0 = inlined_call_operand.vmem [shape: f32[24,32], index: 0, kind: input, shape index: {}]   ;;  %s722_s1 = inlined_call_operand.vmem [shape: f32[128,32], index: 1, kind: input, shape index: {}]   ;;  %s723_s2 = inlined_call_operand.hbm [shape: f32[24,128], index: 2, kind: output, shape index: {}]  }
   0x1   :  { %9 = vsyncpa [#allocation3 + $0x1], 0  ;;  %s563_s9 = smov 0   ;;  %s565_s10 = smov 0  }
   0x2   :  { %s567_s11 = smov 0   ;;  %s569_s12 = smov 0  }
   0x3 LB: > { %s584_s13 = sadd.s32 4294967295, %s543_s12   ;;  %s358_s14 = sadd.s32 4294967294, %s543_s12   ;;  %s543_s12 = sphi %s569_s12, %s729_s12   ;;  %s539_s11 = sphi %s567_s11, %s728_s11   ;;  %s535_s10 = sphi %s565_s10, %s727_s10   ;;  %s531_s9 = sphi %s563_s9, %s726_s9  }
   0x4   : > { %s588_s15 = sadd.s32 1, %s543_s12   ;;  %s69_s16 = sadd.s32 1, %s539_s11 }
   0x5   : > { %s66_s17 = ssub.s32 %s543_s12, %s588_s15  ;;  %p79_p0 = scmp.ne.s32.totalorder %s539_s11, %s535_s10 }
   0x6   : > { %p67_p1 = scmp.eq.s32.totalorder %s66_s17, 0  ;;  %p80_p2 = scmp.eq.s32.totalorder %s584_s13, 2 }
   0x7   : > { %p85_p3 = scmp.ne.s32.totalorder %s535_s10, %s531_s9  ;;  %p86_p4 = scmp.eq.s32.totalorder %s358_s14, 2 }
   0x8   : > { %s599_s18 = scalar_select %p67_p1, %s539_s11, %s69_s16  }
   0x9   : > { %p601_p5 = por %p80_p2, %p79_p0  ;;  %p605_p6 = por %p86_p4, %p85_p3 }
   0xa   : > { %p361_p7 = scmp.ge.s32.totalorder %s543_s12, 1  ;;  %p114_p8 = scmp.lt.s32.totalorder %s543_s12, 4 }
   0xc   : > { %p115_p9 = pnand %p361_p7, %p114_p8 }
   0xd   : > { %p135_p10 = scmp.lt.s32.totalorder (!%p115_p9), %s584_s13, 2  ;;  %s132_s17 = sand.u32 (!%p115_p9), 1, %s535_s10  }
   0xe   : > { %118 = sbr.rel (%p115_p9) target bundleno = 322 (0x142), region = 28  ;;  %s362_s21 = sshll.u32 (!%p115_p9), %s132_s17, 3 }
   0xf   : > { %s383_s22 = sshll.u32 (!%p115_p9), %s584_s13, 7  ;;  %s134_s23 = scalar_lea.vmem (!%p115_p9), [#allocation2], %s362_s21 }
  0x10   : > { %s299_s24 = sshll.u32 (!%p115_p9), %s134_s23, 4  ;;  %s686_s27 = scalar_lea.hbm (!%p115_p9), %s723_s2, %s383_s22  ;;  %s300_s24 = int_to_ptr.vmem [resolvable:$true] %s299_s24 }
  0x11   : > { %s286_s28 = scalar_lea.sflag (!%p115_p9), [#allocation3], %s132_s17  ;;  %s483_s29 = scalar_lea.vmem (!%p115_p9), %s300_s24, 128 }
  0x12   : > { %p484_p11 = scmp.ne.s32.totalorder (!%p115_p9), %s300_s24, %s483_s29 }
  0x13   : > { %v155_v0 = vld [vmem:[%s722_s1 + $0x78] sm:$0xff]  ;;  %vm156_vm0 = vcmask 261120   ;;  %v545_v1 = vmov 0.0   ;;  %vm546_vm1 = vmmov 0   ;;  %v154_v2 = vld [vmem:[%s722_s1 + $0x70] sm:$0xff]  ;;  %v153_v3 = vld [vmem:[%s722_s1 + $0x68] sm:$0xff] }
  0x14   : > { %403 = vmatprep.subr.mxu0 %v545_v1  ;;  %435 = vmatprep.mubr.msk.f32.mxu0 %vm546_vm1, %v545_v1  ;;  %v152_v4 = vld [vmem:[%s722_s1 + $0x60] sm:$0xff]  ;;  %v151_v5 = vld [vmem:[%s722_s1 + $0x58] sm:$0xff]  ;;  %v150_v6 = vld [vmem:[%s722_s1 + $0x50] sm:$0xff]  ;;  %s136_s30 = scalar_select %p135_p10, %s584_s13, 2 }
  0x15   : > { %404 = vmatpush3.xpose.msk.msra.mxu0 %vm156_vm0, %v155_v0  ;;  %v149_v7 = vld [vmem:[%s722_s1 + $0x48] sm:$0xff]  ;;  %v148_v8 = vld [vmem:[%s722_s1 + $0x40] sm:$0xff]  ;;  %v147_v9 = vld [vmem:[%s722_s1 + $0x38] sm:$0xff]  ;;  %p485_p12 = pnand %p484_p11, %p601_p5 }
  0x16   : > { %405 = vmatprep.subr.mxu0 %v545_v1  ;;  %v146_v10 = vld [vmem:[%s722_s1 + $0x30] sm:$0xff]  ;;  %v145_v11 = vld [vmem:[%s722_s1 + $0x28] sm:$0xff]  ;;  %v144_v12 = vld [vmem:[%s722_s1 + $0x20] sm:$0xff]  ;;  %s363_s5 = sshll.u32 %s136_s30, 3  ;;  %s547_s30 = smov [#allocation2]  }
  0x17   : > { %v143_v13 = vld [vmem:[%s722_s1 + $0x18] sm:$0xff]  ;;  %v142_v14 = vld [vmem:[%s722_s1 + $0x10] sm:$0xff]  ;;  %v141_v15 = vld [vmem:[%s722_s1 + $0x8] sm:$0xff]  ;;  %s138_s16 = scalar_lea.vmem %s721_s0, %s363_s5  ;;  %p486_p13 = pneg %p485_p12 }
  0x18   : > { %v140_v16 = vld [vmem:[%s722_s1] sm:$0xff]  ;;  %s487_s3 = sshll.u32 %s547_s30, 4  ;;  %s488_s3 = int_to_ptr.vmem [resolvable:$false] %s487_s3 }
  0x19   : > { %406 = vmatpush3.xpose.msk.msra.mxu0 %vm156_vm0, %v154_v2  ;;  %v139_v17 = vld [vmem:[%s138_s16] sm:$0xff]  ;;  %s489_s13 = scalar_lea.vmem %s488_s3, 256  ;;  %p490_p0 = scmp.lt.s32.totalorder %s300_s24, %s488_s3 }
  0x1a   : > { %407 = vmatprep.subr.mxu0 %v545_v1  ;;  %p491_p1 = scmp.lt.s32.totalorder %s489_s13, %s483_s29 }
  0x1c   : > { %p492_p2 = por %p491_p1, %p490_p0 }
  0x1d   : > { %408 = vmatpush3.xpose.msk.msra.mxu0 %vm156_vm0, %v153_v3 }
  0x1e   : > { %409 = vmatprep.subr.mxu0 %v545_v1  ;;  %p493_p3 = pnand %p492_p2, %p486_p13 }
  0x21   : > { %410 = vmatpush3.xpose.msk.msra.mxu0 %vm156_vm0, %v152_v4 }
  0x22   : > { %411 = vmatprep.subr.mxu0 %v545_v1 }
  0x25   : > { %412 = vmatpush3.xpose.msk.msra.mxu0 %vm156_vm0, %v151_v5 }
  0x26   : > { %413 = vmatprep.subr.mxu0 %v545_v1 }
  0x29   : > { %414 = vmatpush3.xpose.msk.msra.mxu0 %vm156_vm0, %v150_v6 }
  0x2a   : > { %415 = vmatprep.subr.mxu0 %v545_v1 }
  0x2d   : > { %416 = vmatpush3.xpose.msk.msra.mxu0 %vm156_vm0, %v149_v7 }
  0x2e   : > { %417 = vmatprep.subr.mxu0 %v545_v1 }
  0x31   : > { %418 = vmatpush3.xpose.msk.msra.mxu0 %vm156_vm0, %v148_v8 }
  0x32   : > { %419 = vmatprep.subr.mxu0 %v545_v1 }
  0x35   : > { %420 = vmatpush3.xpose.msk.msra.mxu0 %vm156_vm0, %v147_v9 }
  0x36   : > { %421 = vmatprep.subr.mxu0 %v545_v1 }
  0x39   : > { %422 = vmatpush3.xpose.msk.msra.mxu0 %vm156_vm0, %v146_v10 }
  0x3a   : > { %423 = vmatprep.subr.mxu0 %v545_v1 }
  0x3d   : > { %424 = vmatpush3.xpose.msk.msra.mxu0 %vm156_vm0, %v145_v11 }
  0x3e   : > { %425 = vmatprep.subr.mxu0 %v545_v1 }
  0x41   : > { %426 = vmatpush3.xpose.msk.msra.mxu0 %vm156_vm0, %v144_v12 }
  0x42   : > { %427 = vmatprep.subr.mxu0 %v545_v1 }
  0x45   : > { %428 = vmatpush3.xpose.msk.msra.mxu0 %vm156_vm0, %v143_v13 }
  0x46   : > { %429 = vmatprep.subr.mxu0 %v545_v1 }
  0x49   : > { %430 = vmatpush3.xpose.msk.msra.mxu0 %vm156_vm0, %v142_v14 }
  0x4a   : > { %431 = vmatprep.subr.mxu0 %v545_v1 }
  0x4d   : > { %432 = vmatpush3.xpose.msk.msra.mxu0 %vm156_vm0, %v141_v15 }
  0x4e   : > { %433 = vmatprep.subr.mxu0 %v545_v1 }
  0x51   : > { %434 = vmatpush3.xpose.msk.msra.mxu0 %vm156_vm0, %v140_v16 }
  0x54   : > { %436 = vmatmul.mubr.msk.f32.vlgmr.msra.gmra.mxu0 %vm156_vm0, %v139_v17 }
 0x114   : > { %v274_v18 = vpop.f32.mrf.mxu0 }
 0x115   : > { %v381_v19 = vmul.f32 -1.442695, %v274_v18 }
 0x116   : > { %v437_v20 = vpop.f32.mrf.mxu0 }
 0x117   : > { %479 = vpow2.f32 %v381_v19 }
 0x124   : > { %v480_v21 = vpop.eup %479 }
 0x125   : > { %v281_v22 = vadd.f32 1.0, %v480_v21 }
 0x127   : > { %481 = vrcp.f32 %v281_v22 }
 0x134   : > { %v482_v23 = vpop.eup %481 }
 0x135   : > { %284 = vst [vmem:[%s134_s23] sm:$0xff] %v482_v23 }
 0x136   : > { %496 = shalt.err (!%p493_p3)
}
 0x137   : > { %s497_s4 = scalar_lea.hbm %s686_s27, 128  ;;  %s501_s7 = scalar_lea.hbm %s723_s2, 384 }
 0x138   : > { %p498_p4 = scmp.ne.s32.totalorder %s686_s27, %s497_s4  ;;  %p502_p9 = scmp.lt.s32.totalorder %s686_s27, %s723_s2 }
 0x139   : > { %p503_p10 = scmp.lt.s32.totalorder %s501_s7, %s497_s4 }
 0x13a   : > { %p499_p7 = pnand %p498_p4, %p601_p5 }
 0x13b   : > { %p504_p11 = por %p503_p10, %p502_p9 }
 0x13c   : > { %p500_p8 = pneg %p499_p7 }
 0x13e   : > { %p505_p12 = pnand %p504_p11, %p500_p8 }
 0x140   : > { %508 = shalt.err (!%p505_p12)
}
 0x141   : > { %438 = dma.vmem_to_hbm [thread:$0]  (%p601_p5), %s300_s24, 128, %s686_s27, %s286_s28  }
 0x142 PF: > { %p444_p13 = scmp.ge.s32.totalorder %s543_s12, 2  ;;  %s311_s16 = sand.u32 1, %s531_s9  }
 0x143   : > { %s312_s17 = scalar_lea.sflag [#allocation3], %s311_s16 }
 0x144   : > { %p441_p0 = pnand %p444_p13, %p605_p6 }
 0x146   : > { %p442_p1 = pneg %p441_p0 }
 0x148   : > { %526 = dma.done.wait (%p442_p1), %s312_s17, 128  }
 0x149   : > { %528 = vsyncadd (%p442_p1), %s312_s17, 4294967168  ;;  %p12_p2 = scmp.ge.s32.totalorder %s588_s15, 5   ;;  %s726_s9 = smov %s535_s10 }
 0x14a   : > { %s727_s10 = smov %s539_s11  ;;  %s728_s11 = smov %s599_s18 }
 0x14b   : > { %s729_s12 = smov %s588_s15  ;;  %14 = sbr.rel (!%p12_p2) target bundleno = 3 (0x3), region = 63 }
 0x150   :  { %317 = vsyncpa [#allocation3], 1 }
 0x151   :  { %319 = vsyncpa [#allocation3 + $0x1], 1 }

</bundles_post_ra>
